<compile_context>
chip_gen: v7x
topology: tpu7x:2x2x1
jax: 0.10.0
libtpu: 0.0.40
codegen_flags: <defaults>
</compile_context>

<pallas_src>
import functools

import numpy as np
import jax
import jax.numpy as jnp
from jax.experimental import pallas as pl
from jax.experimental.pallas import tpu as pltpu


def _build_path_expansion(depth):
    """Static per-level path matrices.

    D3[d, i, j] = +1 if internal node i (heap index) is the level-d ancestor of
                  leaf j and the path turns LEFT at i,
                  -1 if it turns RIGHT, 0 otherwise.
    c[d, j]     = 1 if leaf j turns RIGHT at level d else 0.
    Then  factor_d = probs @ D3[d] + c[d]  gives, per leaf, p (left) or 1-p
    (right) of its level-d ancestor, and
      leaf_pp = pp0 * prod_d factor_d.
    """
    n_nodes = (1 << depth) - 1
    n_leaves = 1 << depth
    D3 = np.zeros((depth, n_nodes, n_leaves), np.float32)
    c = np.zeros((depth, n_leaves), np.float32)
    for j in range(n_leaves):
        node = 0
        for d in range(depth):
            bit = (j >> (depth - 1 - d)) & 1  # 0 = left, 1 = right
            if bit == 0:
                D3[d, node, j] = 1.0
            else:
                D3[d, node, j] = -1.0
                c[d, j] = 1.0
            node = 2 * node + 1 + bit
    return D3, c


def _sdt_kernel(x_ref, w_ref, b_ref, beta_ref, pp0_ref, d3_ref, c_ref,
                out_ref, *, depth):
    n_nodes = w_ref.shape[1]

    # All node linears in one MXU matmul (bf16 operands, f32 accumulate),
    # then beta scale + sigmoid on VPU/EUP in f32.
    logits = jnp.dot(x_ref[...], w_ref[...],
                     preferred_element_type=jnp.float32) + b_ref[...]   # (tb, N)
    probs = jax.nn.sigmoid(beta_ref[...] * logits)                      # (tb, N)

    # Level-wise, lane-dense leaf path probabilities.
    leaf_pp = pp0_ref[...]                                              # (tb, 1)
    for d in range(depth):
        factor = jnp.dot(probs, d3_ref[d],
                         preferred_element_type=jnp.float32)            # (tb, L)
        factor = factor + c_ref[d:d + 1, :]                             # p or 1-p
        leaf_pp = leaf_pp * factor                                      # (tb, L)

    # Fused lane-contiguous output slab: [alphas | leaf path probs].
    # alpha_i == sigmoid prob_i exactly (sum over a size-1 dim cancels).
    out_ref[:, :n_nodes] = probs
    out_ref[:, n_nodes:] = leaf_pp


@functools.partial(jax.jit, static_argnames=("tile_b", "use_bf16"))
def soft_decision_tree_forward(x, W, b, beta, pp0, *, tile_b=512, use_bf16=True):
    """x: (B,F) f32, W: (F,N) f32, b/beta: (1,N) f32, pp0: (B,1) f32.

    Returns (alphas (B,N), leaf_path_probs (B,L))."""
    B, F = x.shape
    N = W.shape[1]
    L = N + 1
    depth = L.bit_length() - 1
    assert (1 << depth) == L, "W must have 2**depth - 1 node columns"

    tile_b = min(tile_b, B)
    if B % tile_b != 0:
        tile_b = B  # small / ragged batches: single tile

    D3, c = _build_path_expansion(depth)
    x_in = x.astype(jnp.bfloat16) if use_bf16 else x
    W_in = W.astype(jnp.bfloat16) if use_bf16 else W

    out = pl.pallas_call(
        functools.partial(_sdt_kernel, depth=depth),
        out_shape=jax.ShapeDtypeStruct((B, N + L), jnp.float32),
        grid_spec=pltpu.PrefetchScalarGridSpec(
            num_scalar_prefetch=0,
            grid=(B // tile_b,),
            in_specs=[
                pl.BlockSpec((tile_b, F), lambda i: (i, 0)),        # x (tiled)
                pl.BlockSpec((F, N), lambda i: (0, 0)),             # W (resident)
                pl.BlockSpec((1, N), lambda i: (0, 0)),             # b
                pl.BlockSpec((1, N), lambda i: (0, 0)),             # beta
                pl.BlockSpec((tile_b, 1), lambda i: (i, 0)),        # pp0 (tiled)
                pl.BlockSpec((depth, N, L), lambda i: (0, 0, 0)),   # D3
                pl.BlockSpec((depth, L), lambda i: (0, 0)),         # c
            ],
            out_specs=pl.BlockSpec((tile_b, N + L), lambda i: (i, 0)),
        ),
        compiler_params=pltpu.CompilerParams(
            dimension_semantics=("parallel",),   # megacore shard on v7x
        ),
    )(x_in, W_in, b, beta, pp0, jnp.asarray(D3), jnp.asarray(c))

    return out[:, :N], out[:, N:]


def _reference_forward(x, W, b, beta, pp0):
    """Pure-JAX mirror of the recursive PyTorch forward (for verification)."""
    logits = jnp.dot(x, W, preferred_element_type=jnp.float32) + b
    probs = jax.nn.sigmoid(beta * logits)                # (B, N)
    n_nodes = W.shape[1]
    n_leaves = n_nodes + 1
    node_pp = [None] * n_nodes
    node_pp[0] = pp0
    alphas = [None] * n_nodes
    leaves = [None] * n_leaves
    for i in range(n_nodes):
        pp_i = node_pp[i]
        p_i = probs[:, i:i + 1]
        alphas[i] = jnp.sum(p_i * pp_i, axis=1, keepdims=True) / jnp.sum(
            pp_i, axis=1, keepdims=True)
        left, right = p_i * pp_i, (1.0 - p_i) * pp_i
        li = 2 * i + 1
        if li < n_nodes:
            node_pp[li], node_pp[li + 1] = left, right
        else:
            pos = i - (n_nodes // 2)
            leaves[2 * pos], leaves[2 * pos + 1] = left, right
    return jnp.concatenate(alphas, axis=1), jnp.concatenate(leaves, axis=1)


if __name__ == "__main__":
    # Setup consistent with SoftDecisionTree(depth=3, input_size=128, ...).
    depth = 3
    input_size = 128
    batch = 256                       # small, but >1 grid tile to exercise pipelining
    class_reward_vector = [0.0, 0.5, 1.0, 2.0]   # only its length matters for forward
    n_nodes = 2 ** depth - 1          # 7 internal nodes
    n_leaves = 2 ** depth             # 8 leaves

    key = jax.random.PRNGKey(0)
    kx, kw, kb, kbeta, kleaf = jax.random.split(key, 5)

    x = jax.random.normal(kx, (batch, input_size), dtype=jnp.float32)
    pp0 = jnp.ones((batch, 1), dtype=jnp.float32)   # root path_prob, as in usage

    # Parameters (deterministic, matching torch init distributions/shapes).
    bound = float(1.0 / np.sqrt(input_size))
    W = jax.random.uniform(kw, (input_size, n_nodes), jnp.float32, -bound, bound)
    b = jax.random.uniform(kb, (1, n_nodes), jnp.float32, -bound, bound)
    beta = jax.random.uniform(kbeta, (1, n_nodes), jnp.float32, 0.0, 1.0)
    # Leaf distributions exist in the module but are only used by get_loss.
    # TODO(synk): get_loss (leaf softmax + reward inner product) could be fused
    # into this kernel as one more tiny matmul over the (B, L) leaf slab.
    leaf_dist = jax.random.uniform(kleaf, (n_leaves, len(class_reward_vector)),
                                   jnp.float32, 0.0, 1.0)

    alphas, leaf_pp = soft_decision_tree_forward(x, W, b, beta, pp0, tile_b=128)
    jax.block_until_ready((alphas, leaf_pp))

    # Reference uses the same bf16-cast matmul operands so only kernel-vs-XLA
    # rounding differs.
    ref_alphas, ref_leaf_pp = _reference_forward(
        x.astype(jnp.bfloat16), W.astype(jnp.bfloat16), b, beta, pp0)

    assert alphas.shape == (batch, n_nodes)
    assert leaf_pp.shape == (batch, n_leaves)
    assert jnp.allclose(alphas, ref_alphas, atol=1e-4, rtol=1e-4)
    assert jnp.allclose(leaf_pp, ref_leaf_pp, atol=1e-4, rtol=1e-4)
    # Sanity: leaf path probabilities partition the root path probability.
    assert jnp.allclose(jnp.sum(leaf_pp, axis=1), pp0[:, 0], atol=1e-4)

    print("KERNEL_OK")
</pallas_src>

<mosaic_0001>
module attributes {stable_mosaic.version = 11 : i64} {
  func.func @_sdt_kernel(%arg0: i32, %arg1: memref<128x128xbf16, #tpu.memory_space<vmem>>, %arg2: memref<128x7xbf16, #tpu.memory_space<vmem>>, %arg3: memref<1x7xf32, #tpu.memory_space<vmem>>, %arg4: memref<1x7xf32, #tpu.memory_space<vmem>>, %arg5: memref<128x1xf32, #tpu.memory_space<vmem>>, %arg6: memref<3x7x8xf32, #tpu.memory_space<vmem>>, %arg7: memref<3x8xf32, #tpu.memory_space<vmem>>, %arg8: memref<128x15xf32, #tpu.memory_space<vmem>>) attributes {dimension_semantics = [#tpu.dimension_semantics<parallel>], iteration_bounds = array<i64: 2>, scalar_prefetch = 0 : i64, scratch_operands = 0 : i64, tpu.core_type = #tpu.core_type<tc>, window_params = [{transform_indices = @transform_0, window_bounds = array<i64: 128, 128>}, {pipeline_mode = #tpu.pipeline_mode<synchronous>, transform_indices = @transform_1, window_bounds = array<i64: 128, 7>}, {pipeline_mode = #tpu.pipeline_mode<synchronous>, transform_indices = @transform_2, window_bounds = array<i64: 1, 7>}, {pipeline_mode = #tpu.pipeline_mode<synchronous>, transform_indices = @transform_3, window_bounds = array<i64: 1, 7>}, {transform_indices = @transform_4, window_bounds = array<i64: 128, 1>}, {pipeline_mode = #tpu.pipeline_mode<synchronous>, transform_indices = @transform_5, window_bounds = array<i64: 3, 7, 8>}, {pipeline_mode = #tpu.pipeline_mode<synchronous>, transform_indices = @transform_6, window_bounds = array<i64: 3, 8>}, {transform_indices = @transform_7, window_bounds = array<i64: 128, 15>}]} {
    %c0 = arith.constant 0 : index
    %c0_0 = arith.constant 0 : index
    %0 = vector.load %arg1[%c0, %c0_0] : memref<128x128xbf16, #tpu.memory_space<vmem>>, vector<128x128xbf16>
    %c0_1 = arith.constant 0 : index
    %c0_2 = arith.constant 0 : index
    %1 = vector.load %arg2[%c0_1, %c0_2] : memref<128x7xbf16, #tpu.memory_space<vmem>>, vector<128x7xbf16>
    %cst = arith.constant dense<0.000000e+00> : vector<128x7xf32>
    %2 = tpu.matmul %0, %1, %cst {dimension_numbers = #tpu.dot_dimension_numbers<[1], [0], [0], [1], [0, 0, 1, 1], [], []>} : vector<128x128xbf16>, vector<128x7xbf16>, vector<128x7xf32> -> vector<128x7xf32>
    %c0_3 = arith.constant 0 : index
    %c0_4 = arith.constant 0 : index
    %3 = vector.load %arg3[%c0_3, %c0_4] : memref<1x7xf32, #tpu.memory_space<vmem>>, vector<1x7xf32>
    %4 = vector.broadcast %3 : vector<1x7xf32> to vector<128x7xf32>
    %5 = arith.addf %2, %4 : vector<128x7xf32>
    %c0_5 = arith.constant 0 : index
    %c0_6 = arith.constant 0 : index
    %6 = vector.load %arg4[%c0_5, %c0_6] : memref<1x7xf32, #tpu.memory_space<vmem>>, vector<1x7xf32>
    %7 = vector.broadcast %6 : vector<1x7xf32> to vector<128x7xf32>
    %8 = arith.mulf %7, %5 : vector<128x7xf32>
    %9 = arith.negf %8 : vector<128x7xf32>
    %10 = math.exp %9 : vector<128x7xf32>
    %cst_7 = arith.constant 1.000000e+00 : f32
    %11 = vector.broadcast %cst_7 : f32 to vector<128x7xf32>
    %12 = arith.addf %11, %10 : vector<128x7xf32>
    %13 = arith.divf %11, %12 : vector<128x7xf32>
    %c0_8 = arith.constant 0 : index
    %c0_9 = arith.constant 0 : index
    %14 = vector.load %arg5[%c0_8, %c0_9] : memref<128x1xf32, #tpu.memory_space<vmem>>, vector<128x1xf32>
    %c0_10 = arith.constant 0 : index
    %c0_11 = arith.constant 0 : index
    %c0_12 = arith.constant 0 : index
    %15 = vector.load %arg6[%c0_10, %c0_11, %c0_12] : memref<3x7x8xf32, #tpu.memory_space<vmem>>, vector<1x7x8xf32>
    %16 = vector.shape_cast %15 : vector<1x7x8xf32> to vector<7x8xf32>
    %cst_13 = arith.constant dense<0.000000e+00> : vector<128x8xf32>
    %17 = tpu.matmul %13, %16, %cst_13 {dimension_numbers = #tpu.dot_dimension_numbers<[1], [0], [0], [1], [0, 0, 1, 1], [], []>} : vector<128x7xf32>, vector<7x8xf32>, vector<128x8xf32> -> vector<128x8xf32>
    %c0_14 = arith.constant 0 : index
    %c0_15 = arith.constant 0 : index
    %18 = vector.load %arg7[%c0_14, %c0_15] : memref<3x8xf32, #tpu.memory_space<vmem>>, vector<1x8xf32>
    %19 = vector.broadcast %18 : vector<1x8xf32> to vector<128x8xf32>
    %20 = arith.addf %17, %19 : vector<128x8xf32>
    %21 = vector.broadcast %14 : vector<128x1xf32> to vector<128x8xf32>
    %22 = arith.mulf %21, %20 : vector<128x8xf32>
    %c1 = arith.constant 1 : index
    %c0_16 = arith.constant 0 : index
    %c0_17 = arith.constant 0 : index
    %23 = vector.load %arg6[%c1, %c0_16, %c0_17] : memref<3x7x8xf32, #tpu.memory_space<vmem>>, vector<1x7x8xf32>
    %24 = vector.shape_cast %23 : vector<1x7x8xf32> to vector<7x8xf32>
    %cst_18 = arith.constant dense<0.000000e+00> : vector<128x8xf32>
    %25 = tpu.matmul %13, %24, %cst_18 {dimension_numbers = #tpu.dot_dimension_numbers<[1], [0], [0], [1], [0, 0, 1, 1], [], []>} : vector<128x7xf32>, vector<7x8xf32>, vector<128x8xf32> -> vector<128x8xf32>
    %c1_19 = arith.constant 1 : index
    %c0_20 = arith.constant 0 : index
    %26 = vector.load %arg7[%c1_19, %c0_20] : memref<3x8xf32, #tpu.memory_space<vmem>>, vector<1x8xf32>
    %27 = vector.broadcast %26 : vector<1x8xf32> to vector<128x8xf32>
    %28 = arith.addf %25, %27 : vector<128x8xf32>
    %29 = arith.mulf %22, %28 : vector<128x8xf32>
    %c2 = arith.constant 2 : index
    %c0_21 = arith.constant 0 : index
    %c0_22 = arith.constant 0 : index
    %30 = vector.load %arg6[%c2, %c0_21, %c0_22] : memref<3x7x8xf32, #tpu.memory_space<vmem>>, vector<1x7x8xf32>
    %31 = vector.shape_cast %30 : vector<1x7x8xf32> to vector<7x8xf32>
    %cst_23 = arith.constant dense<0.000000e+00> : vector<128x8xf32>
    %32 = tpu.matmul %13, %31, %cst_23 {dimension_numbers = #tpu.dot_dimension_numbers<[1], [0], [0], [1], [0, 0, 1, 1], [], []>} : vector<128x7xf32>, vector<7x8xf32>, vector<128x8xf32> -> vector<128x8xf32>
    %c2_24 = arith.constant 2 : index
    %c0_25 = arith.constant 0 : index
    %33 = vector.load %arg7[%c2_24, %c0_25] : memref<3x8xf32, #tpu.memory_space<vmem>>, vector<1x8xf32>
    %34 = vector.broadcast %33 : vector<1x8xf32> to vector<128x8xf32>
    %35 = arith.addf %32, %34 : vector<128x8xf32>
    %36 = arith.mulf %29, %35 : vector<128x8xf32>
    %c0_26 = arith.constant 0 : index
    %c0_27 = arith.constant 0 : index
    %37 = vector.load %arg8[%c0_26, %c0_27] : memref<128x15xf32, #tpu.memory_space<vmem>>, vector<128x7xf32>
    tpu.vector_store %arg8[%c0_26, %c0_27], %13 {strides = array<i32>} : memref<128x15xf32, #tpu.memory_space<vmem>>, vector<128x7xf32>,
    %c0_28 = arith.constant 0 : index
    %c7 = arith.constant 7 : index
    %38 = vector.load %arg8[%c0_28, %c7] : memref<128x15xf32, #tpu.memory_space<vmem>>, vector<128x8xf32>
    tpu.vector_store %arg8[%c0_28, %c7], %36 {strides = array<i32>} : memref<128x15xf32, #tpu.memory_space<vmem>>, vector<128x8xf32>,
    return
  }
  func.func @transform_0(%arg0: i32) -> (i32, i32) {
    %c0_i32 = arith.constant 0 : i32
    %c0_i32_0 = arith.constant 0 : i32
    return %arg0, %c0_i32 : i32, i32
  }
  func.func @transform_1(%arg0: i32) -> (i32, i32) {
    %c0_i32 = arith.constant 0 : i32
    %c0_i32_0 = arith.constant 0 : i32
    %c0_i32_1 = arith.constant 0 : i32
    return %c0_i32, %c0_i32_0 : i32, i32
  }
  func.func @transform_2(%arg0: i32) -> (i32, i32) {
    %c0_i32 = arith.constant 0 : i32
    %c0_i32_0 = arith.constant 0 : i32
    %c0_i32_1 = arith.constant 0 : i32
    return %c0_i32, %c0_i32_0 : i32, i32
  }
  func.func @transform_3(%arg0: i32) -> (i32, i32) {
    %c0_i32 = arith.constant 0 : i32
    %c0_i32_0 = arith.constant 0 : i32
    %c0_i32_1 = arith.constant 0 : i32
    return %c0_i32, %c0_i32_0 : i32, i32
  }
  func.func @transform_4(%arg0: i32) -> (i32, i32) {
    %c0_i32 = arith.constant 0 : i32
    %c0_i32_0 = arith.constant 0 : i32
    return %arg0, %c0_i32 : i32, i32
  }
  func.func @transform_5(%arg0: i32) -> (i32, i32, i32) {
    %c0_i32 = arith.constant 0 : i32
    %c0_i32_0 = arith.constant 0 : i32
    %c0_i32_1 = arith.constant 0 : i32
    %c0_i32_2 = arith.constant 0 : i32
    return %c0_i32, %c0_i32_0, %c0_i32_1 : i32, i32, i32
  }
  func.func @transform_6(%arg0: i32) -> (i32, i32) {
    %c0_i32 = arith.constant 0 : i32
    %c0_i32_0 = arith.constant 0 : i32
    %c0_i32_1 = arith.constant 0 : i32
    return %c0_i32, %c0_i32_0 : i32, i32
  }
  func.func @transform_7(%arg0: i32) -> (i32, i32) {
    %c0_i32 = arith.constant 0 : i32
    %c0_i32_0 = arith.constant 0 : i32
    return %arg0, %c0_i32 : i32, i32
  }
}

</mosaic_0001>

<bundles_post_ra>
// kernel: soft_decision_tree_forward.1
= control target key start
LH: loop header
LB: loop body
LE: loop exit
PB: predicated region body
PF: predicated region fallthrough
CT: control target
= control target key end

     0   :  { %s1903_s24 = smov 0   ;;  %s2320_s0 = inlined_call_operand.vmem [shape: bf16[256,128], index: 0, kind: input, shape index: {}]   ;;  %s2321_s1 = inlined_call_operand.vmem [shape: bf16[128,7], index: 1, kind: input, shape index: {}]   ;;  %s2322_s2 = inlined_call_operand.vmem [shape: f32[1,7], index: 2, kind: input, shape index: {}]   ;;  %s2323_s3 = inlined_call_operand.vmem [shape: f32[1,7], index: 3, kind: input, shape index: {}]   ;;  %s2324_s4 = inlined_call_operand.vmem [shape: f32[256,1], index: 4, kind: input, shape index: {}]   ;;  %s2325_s5 = inlined_call_operand.vmem [shape: f32[3,7,8], index: 5, kind: input, shape index: {}]   ;;  %s2326_s6 = inlined_call_operand.vmem [shape: f32[3,8], index: 6, kind: input, shape index: {}]   ;;  %s2327_s7 = inlined_call_operand.vmem [shape: f32[256,15], index: 7, kind: output, shape index: {}]  }
   0x1 LB: > { %s1479_s25 = sadd.s32 4294967295, %s1859_s24   ;;  %p1483_p0 = scmp.ge.s32.totalorder %s1859_s24, 1  ;;  %s1859_s24 = sphi %s1903_s24, %s17_s24  }
   0x2   : > { %p249_p1 = scmp.lt.s32.totalorder %s1859_s24, 3 }
   0x4   : > { %p250_p2 = pnand %p1483_p0, %p249_p1 }
   0x5   : > { %v1773_v0 = vld [vmem:[%s2321_s1] sm:$0xff] (!%p250_p2)   ;;  %s1484_s28 = sshll.u32 (!%p250_p2), %s1479_s25, 4  ;;  %v1774_v1 = vld [vmem:[%s2321_s1 + $0x8] sm:$0xff] (!%p250_p2)   ;;  %v1775_v2 = vld [vmem:[%s2321_s1 + $0x10] sm:$0xff] (!%p250_p2)   ;;  %vm727_vm0 = vcmask (!%p250_p2), 1046528   ;;  %v1861_v19 = vmov (!%p250_p2), 0  }
   0x6   : > { %253 = sbr.rel (%p250_p2) target bundleno = 689 (0x2b1), region = 48  ;;  %p287_p3 = scmp.lt.s32.totalorder (!%p250_p2), %s1484_s28, 31  ;;  %1649 = vmatprep.subr.bf16.mxu0 (!%p250_p2), %v1773_v0  ;;  %v1776_v3 = vld [vmem:[%s2321_s1 + $0x18] sm:$0xff] (!%p250_p2)   ;;  %v1777_v5 = vld [vmem:[%s2321_s1 + $0x20] sm:$0xff] (!%p250_p2)   ;;  %v1778_v6 = vld [vmem:[%s2321_s1 + $0x28] sm:$0xff] (!%p250_p2)   ;;  %1771 = vset.pattern.permute.xlu0 (!%p250_p2), %v1861_v19  ;;  %vm678_vm1 = vcmask (!%p250_p2), 56320  }
   0x7   : > { %1650 = vmatpush3.bf16.msra.mxu0 (!%p250_p2), %v1773_v0  ;;  %v1779_v7 = vld [vmem:[%s2321_s1 + $0x30] sm:$0xff] (!%p250_p2)   ;;  %v1780_v8 = vld [vmem:[%s2321_s1 + $0x38] sm:$0xff] (!%p250_p2)   ;;  %v672_v16 = vld [vmem:[%s2325_s5] sm:$0x7f] (!%p250_p2)  ;;  %1772 = vset.pattern.permute.xlu1 (!%p250_p2), %v1861_v19  ;;  %s1862_s26 = smov (!%p250_p2), 7   ;;  %vm1394_vm2 = vcmask (!%p250_p2), 121912  }
   0x8   : > { %1651 = vmatprep.subr.bf16.mxu0 (!%p250_p2), %v1774_v1  ;;  %v1957_v17 = vld [vmem:[%s2325_s5 + $0x10] sm:$0x7f] (!%p250_p2)  ;;  %1681 = vmatprep.subr.msk.mxu1 (!%p250_p2), %vm727_vm0, %v672_v16  ;;  %v1968_v18 = vld [vmem:[%s2325_s5 + $0x8] sm:$0x7f] (!%p250_p2)  ;;  %v1993_v30 = vld [vmem:[%s2322_s2] ss:$0 sm:$0xff] (!%p250_p2) }
   0x9   : > { %1682 = vmatpush3.msk.msra.mxu1 (!%p250_p2), %vm727_vm0, %v672_v16  ;;  %v2000_v34 = vld [vmem:[%s2323_s3] ss:$0 sm:$0xff] (!%p250_p2) }
   0xa   : > { %1707 = vmatprep.subr.msk.mxu1 (!%p250_p2), %vm727_vm0, %v1968_v18 }
   0xb   : > { %1652 = vmatpush3.bf16.msra.mxu0 (!%p250_p2), %v1774_v1 }
   0xc   : > { %1653 = vmatprep.subr.bf16.mxu0 (!%p250_p2), %v1775_v2 }
   0xd   : > { %s2329_s28 = smov (!%p287_p3, %s1484_s28), 31 }
   0xe   : > { %s1485_s10 = sshll.u32 %s2329_s28, 2  ;;  %s1487_s9 = sshll.u32 %s2329_s28, 3 }
   0xf   : > { %s1926_s13 = scalar_lea.vmem %s2320_s0, %s1485_s10  ;;  %1654 = vmatpush3.bf16.msra.mxu0 %v1775_v2  ;;  %s1978_s12 = scalar_lea.vmem %s2324_s4, %s1487_s9 }
  0x10   : > { %v1781_v4 = vld [vmem:[%s1926_s13] sm:$0xff]   ;;  %1655 = vmatprep.subr.bf16.mxu0 %v1776_v3  ;;  %v1782_v9 = vld [vmem:[%s1926_s13 + $0x8] sm:$0xff]   ;;  %v1783_v10 = vld [vmem:[%s1926_s13 + $0x10] sm:$0xff]   ;;  %s2041_s19 = scalar_lea.vmem %s2327_s7, %s1487_s9 }
  0x11   : > { %1665 = vmatprep.mubr.bf16.mxu0 %v1781_v4  ;;  %v1784_v11 = vld [vmem:[%s1926_s13 + $0x18] sm:$0xff]   ;;  %v1785_v12 = vld [vmem:[%s1926_s13 + $0x20] sm:$0xff]   ;;  %v1786_v13 = vld [vmem:[%s1926_s13 + $0x28] sm:$0xff]  }
  0x12   : > { %v1787_v14 = vld [vmem:[%s1926_s13 + $0x30] sm:$0xff]   ;;  %v1788_v15 = vld [vmem:[%s1926_s13 + $0x38] sm:$0xff]   ;;  %v656_v20 = vld [vmem:[%s1978_s12] sm:$0xff] }
  0x13   : > { %1656 = vmatpush3.bf16.msra.mxu0 %v1776_v3  ;;  %v658_v21 = vld [vmem:[%s1978_s12 + $0x10] sm:$0xff]  ;;  %878 = vperm.xlu0 %1771, %v656_v20   ;;  %v657_v22 = vld [vmem:[%s1978_s12 + $0x8] sm:$0xff]  ;;  %v659_v23 = vld [vmem:[%s1978_s12 + $0x18] sm:$0xff] }
  0x14   : > { %1657 = vmatprep.subr.bf16.mxu0 %v1777_v5  ;;  %888 = vperm.xlu1 %1772, %v658_v21   ;;  %v661_v24 = vld [vmem:[%s1978_s12 + $0x28] sm:$0xff]  ;;  %v660_v25 = vld [vmem:[%s1978_s12 + $0x20] sm:$0xff]  ;;  %v663_v26 = vld [vmem:[%s1978_s12 + $0x38] sm:$0xff] }
  0x15   : > { %v662_v27 = vld [vmem:[%s1978_s12 + $0x30] sm:$0xff]  ;;  %v665_v28 = vld [vmem:[%s1978_s12 + $0x48] sm:$0xff]  ;;  %v664_v29 = vld [vmem:[%s1978_s12 + $0x40] sm:$0xff] }
  0x16   : > { %v667_v31 = vld [vmem:[%s1978_s12 + $0x58] sm:$0xff]  ;;  %v666_v32 = vld [vmem:[%s1978_s12 + $0x50] sm:$0xff]  ;;  %v669_v39 = vld [vmem:[%s1978_s12 + $0x68] sm:$0xff] }
  0x17   : > { %1658 = vmatpush3.bf16.msra.mxu0 %v1777_v5  ;;  %883 = vperm.xlu0 %1771, %v657_v22   ;;  %v668_v40 = vld [vmem:[%s1978_s12 + $0x60] sm:$0xff]  ;;  %v671_v50 = vld [vmem:[%s1978_s12 + $0x78] sm:$0xff]  ;;  %v670_v51 = vld [vmem:[%s1978_s12 + $0x70] sm:$0xff] }
  0x18   : > { %1659 = vmatprep.subr.bf16.mxu0 %v1778_v6  ;;  %893 = vperm.xlu1 %1772, %v659_v23  }
  0x1b   : > { %1660 = vmatpush3.bf16.msra.mxu0 %v1778_v6  ;;  %898 = vperm.xlu0 %1771, %v660_v25  }
  0x1c   : > { %1661 = vmatprep.subr.bf16.mxu0 %v1779_v7  ;;  %903 = vperm.xlu1 %1772, %v661_v24  }
  0x1f   : > { %1662 = vmatpush3.bf16.msra.mxu0 %v1779_v7  ;;  %908 = vperm.xlu0 %1771, %v662_v27  }
  0x20   : > { %1663 = vmatprep.subr.bf16.mxu0 %v1780_v8  ;;  %913 = vperm.xlu1 %1772, %v663_v26  }
  0x23   : > { %1664 = vmatpush3.bf16.msra.mxu0 %v1780_v8  ;;  %918 = vperm.xlu0 %1771, %v664_v29  }
  0x24   : > { %1733 = vmatprep.subr.msk.mxu0 %vm727_vm0, %v1957_v17  ;;  %923 = vperm.xlu1 %1772, %v665_v28  }
  0x26   : > { %1666 = vmatmul.mubr.bf16.vlgmr.msra.gmra.mrb[0].mxu0 %v1782_v9 }
  0x27   : > { %1669 = vmatprep.mubr.bf16.mxu0 %v1783_v10  ;;  %1734 = vmatpush3.msk.msra.mxu0 %vm727_vm0, %v1957_v17 }
  0x28   : > { %933 = vperm.xlu1 %1772, %v667_v31   ;;  %928 = vperm.xlu0 %1771, %v666_v32  }
  0x2c   : > { %943 = vperm.xlu1 %1772, %v669_v39   ;;  %938 = vperm.xlu0 %1771, %v668_v40  }
  0x2e   : > { %1670 = vmatmul.mubr.bf16.gmra.mrb[4].mxu0 %v1784_v11 }
  0x2f   : > { %1673 = vmatprep.mubr.bf16.mxu0 %v1785_v12 }
  0x30   : > { %953 = vperm.xlu1 %1772, %v671_v50   ;;  %948 = vperm.xlu0 %1771, %v670_v51  }
  0x36   : > { %1674 = vmatmul.mubr.bf16.gmra.mrb[8].mxu0 %v1786_v13 }
  0x37   : > { %1677 = vmatprep.mubr.bf16.mxu0 %v1787_v14 }
  0x3e   : > { %1678 = vmatmul.mubr.bf16.gmra.mrb[12].mxu0 %v1788_v15 }
  0xf9   : > { %v1667_v33 = vpop.f32.mrb[0].mxu0 }
  0xfa   : > { %v483_v35 = vadd.f32 %v1667_v33, %v1993_v30  ;;  %v474_v36 = vpop.f32.mrb[1].mxu0 }
  0xfb   : > { %v475_v37 = vadd.f32 %v1993_v30, %v474_v36  ;;  %v1668_v38 = vpop.f32.mrb[2].mxu0 }
  0xfc   : > { %v546_v41 = vmul.f32 %v2000_v34, %v483_v35  ;;  %v486_v42 = vadd.f32 %v1668_v38, %v1993_v30  ;;  %v477_v43 = vpop.f32.mrb[3].mxu0 }
  0xfd   : > { %v544_v44 = vmul.f32 %v2000_v34, %v475_v37  ;;  %v478_v45 = vadd.f32 %v1993_v30, %v477_v43 }
  0xfe   : > { %v1510_v46 = vmul.f32 -1.442695, %v546_v41  ;;  %v547_v47 = vmul.f32 %v2000_v34, %v486_v42 }
  0xff   : > { %v1508_v48 = vmul.f32 -1.442695, %v544_v44  ;;  %v545_v49 = vmul.f32 %v2000_v34, %v478_v45 }
 0x100   : > { %1789 = vpow2.f32 %v1510_v46  ;;  %v1511_v52 = vmul.f32 -1.442695, %v547_v47 }
 0x101   : > { %1791 = vpow2.f32 %v1508_v48  ;;  %v1509_v53 = vmul.f32 -1.442695, %v545_v49  ;;  %v1671_v54 = vpop.f32.mrb[4].mxu0 }
 0x102   : > { %1793 = vpow2.f32 %v1511_v52  ;;  %v499_v55 = vadd.f32 %v1671_v54, %v1993_v30  ;;  %v490_v56 = vpop.f32.mrb[5].mxu0 }
 0x103   : > { %1795 = vpow2.f32 %v1509_v53  ;;  %v491_v57 = vadd.f32 %v1993_v30, %v490_v56  ;;  %v1672_v58 = vpop.f32.mrb[6].mxu0 }
 0x104   : > { %v550_v59 = vmul.f32 %v2000_v34, %v499_v55  ;;  %v502_v60 = vadd.f32 %v1672_v58, %v1993_v30  ;;  %v493_v61 = vpop.f32.mrb[7].mxu0 }
 0x105   : > { %v548_v62 = vmul.f32 %v2000_v34, %v491_v57  ;;  %v494_v63 = vadd.f32 %v1993_v30, %v493_v61 }
 0x106   : > { %v1514_v0 = vmul.f32 -1.442695, %v550_v59  ;;  %v551_v1 = vmul.f32 %v2000_v34, %v502_v60 }
 0x107   : > { %v1512_v2 = vmul.f32 -1.442695, %v548_v62  ;;  %v549_v3 = vmul.f32 %v2000_v34, %v494_v63 }
 0x108   : > { %1797 = vpow2.f32 %v1514_v0  ;;  %v1515_v4 = vmul.f32 -1.442695, %v551_v1 }
 0x109   : > { %1799 = vpow2.f32 %v1512_v2  ;;  %v1513_v5 = vmul.f32 -1.442695, %v549_v3  ;;  %v1675_v6 = vpop.f32.mrb[8].mxu0 }
 0x10a   : > { %v1790_v7 = vpop.eup %1789  ;;  %1801 = vpow2.f32 %v1515_v4  ;;  %v515_v8 = vadd.f32 %v1675_v6, %v1993_v30  ;;  %v506_v9 = vpop.f32.mrb[9].mxu0 }
 0x10b   : > { %v1792_v10 = vpop.eup %1791  ;;  %v610_v11 = vadd.f32 1.0, %v1790_v7  ;;  %1803 = vpow2.f32 %v1513_v5  ;;  %v507_v12 = vadd.f32 %v1993_v30, %v506_v9  ;;  %v1676_v13 = vpop.f32.mrb[10].mxu0 }
 0x10c   : > { %v1794_v14 = vpop.eup %1793  ;;  %v608_v15 = vadd.f32 1.0, %v1792_v10  ;;  %v554_v16 = vmul.f32 %v2000_v34, %v515_v8  ;;  %v518_v19 = vadd.f32 %v1676_v13, %v1993_v30  ;;  %v509_v20 = vpop.f32.mrb[11].mxu0 }
 0x10d   : > { %v1796_v21 = vpop.eup %1795  ;;  %1805 = vrcp.f32 %v610_v11  ;;  %v611_v22 = vadd.f32 1.0, %v1794_v14  ;;  %v552_v23 = vmul.f32 %v2000_v34, %v507_v12  ;;  %v510_v24 = vadd.f32 %v1993_v30, %v509_v20 }
 0x10e   : > { %1807 = vrcp.f32 %v608_v15  ;;  %v609_v25 = vadd.f32 1.0, %v1796_v21  ;;  %v1518_v26 = vmul.f32 -1.442695, %v554_v16  ;;  %v555_v27 = vmul.f32 %v2000_v34, %v518_v19 }
 0x10f   : > { %1809 = vrcp.f32 %v611_v22  ;;  %v1516_v28 = vmul.f32 -1.442695, %v552_v23  ;;  %v553_v29 = vmul.f32 %v2000_v34, %v510_v24 }
 0x110   : > { %1811 = vrcp.f32 %v609_v25  ;;  %v1519_v31 = vmul.f32 -1.442695, %v555_v27 }
 0x111   : > { %1813 = vpow2.f32 %v1518_v26  ;;  %v1517_v32 = vmul.f32 -1.442695, %v553_v29  ;;  %v1679_v33 = vpop.f32.mrb[12].mxu0 }
 0x112   : > { %v1798_v35 = vpop.eup %1797  ;;  %1815 = vpow2.f32 %v1516_v28  ;;  %v531_v36 = vadd.f32 %v1679_v33, %v1993_v30  ;;  %v522_v37 = vpop.f32.mrb[13].mxu0 }
 0x113   : > { %v1800_v38 = vpop.eup %1799  ;;  %v614_v39 = vadd.f32 1.0, %v1798_v35  ;;  %1817 = vpow2.f32 %v1519_v31  ;;  %v523_v40 = vadd.f32 %v1993_v30, %v522_v37  ;;  %v1680_v41 = vpop.f32.mrb[14].mxu0 }
 0x114   : > { %v1802_v42 = vpop.eup %1801  ;;  %v612_v43 = vadd.f32 1.0, %v1800_v38  ;;  %1819 = vpow2.f32 %v1517_v32  ;;  %v558_v44 = vmul.f32 %v2000_v34, %v531_v36  ;;  %v534_v45 = vadd.f32 %v1680_v41, %v1993_v30  ;;  %v525_v46 = vpop.f32.mrb[15].mxu0 }
 0x115   : > { %v1804_v47 = vpop.eup %1803  ;;  %1821 = vrcp.f32 %v614_v39  ;;  %v615_v48 = vadd.f32 1.0, %v1802_v42  ;;  %v556_v49 = vmul.f32 %v2000_v34, %v523_v40  ;;  %v526_v50 = vadd.f32 %v1993_v30, %v525_v46  ;;  %v889_v42 = vpop.permute.xlu1 %888 }
 0x116   : > { %1823 = vrcp.f32 %v612_v43  ;;  %v613_v51 = vadd.f32 1.0, %v1804_v47  ;;  %v1522_v52 = vmul.f32 -1.442695, %v558_v44  ;;  %v559_v53 = vmul.f32 %v2000_v34, %v534_v45  ;;  %v879_v47 = vpop.permute.xlu0 %878 }
 0x117   : > { %v2044_v54 = vpop.eup %1805  ;;  %1825 = vrcp.f32 %v615_v48  ;;  %v1520_v55 = vmul.f32 -1.442695, %v556_v49  ;;  %v557_v30 = vmul.f32 %v2000_v34, %v526_v50 }
 0x118   : > { %v2047_v56 = vpop.eup %1807  ;;  %1827 = vrcp.f32 %v613_v51  ;;  %v1523_v57 = vmul.f32 -1.442695, %v559_v53  ;;  %1316 = vst.msk [vmem:[%s2041_s19 + $0x10] sm:$0xff] %vm678_vm1, %v2044_v54 }
 0x119   : > { %v2052_v58 = vpop.eup %1809  ;;  %1829 = vpow2.f32 %v1522_v52  ;;  %v1521_v59 = vmul.f32 -1.442695, %v557_v30  ;;  %1683 = vmatprep.mubr.msk.f32.mxu1 %vm678_vm1, %v2047_v56  ;;  %1735 = vmatprep.mubr.msk.f32.mxu0 %vm678_vm1, %v2047_v56  ;;  %1314 = vst.msk [vmem:[%s2041_s19] sm:$0xff] %vm678_vm1, %v2047_v56  ;;  %v894_v50 = vpop.permute.xlu1 %893 }
 0x11a   : > { %v2061_v34 = vpop.eup %1811  ;;  %1831 = vpow2.f32 %v1520_v55  ;;  %1317 = vst.msk [vmem:[%s2041_s19 + $0x18] sm:$0xff] %vm678_vm1, %v2052_v58  ;;  %v884_v52 = vpop.permute.xlu0 %883 }
 0x11b   : > { %v1814_v60 = vpop.eup %1813  ;;  %1833 = vpow2.f32 %v1523_v57  ;;  %1684 = vmatmul.mubr.msk.f32.vlgmr.msra.gmra.mrb[0].mxu1 %vm678_vm1, %v2061_v34  ;;  %1736 = vmatmul.mubr.msk.f32.vlgmr.msra.gmra.mrb[16].mxu0 %vm678_vm1, %v2061_v34  ;;  %1315 = vst.msk [vmem:[%s2041_s19 + $0x8] sm:$0xff] %vm678_vm1, %v2061_v34 }
 0x11c   : > { %v1816_v61 = vpop.eup %1815  ;;  %v618_v62 = vadd.f32 1.0, %v1814_v60  ;;  %1835 = vpow2.f32 %v1521_v59  ;;  %1708 = vmatpush3.msk.msra.mxu1 %vm727_vm0, %v1968_v18  ;;  %1686 = vmatprep.mubr.msk.f32.mxu1 %vm678_vm1, %v2044_v54  ;;  %v2206_v60 = vld [vmem:[%s2326_s6 + $0x2] ss:$0 sm:$0xff] }
 0x11d   : > { %v1818_v63 = vpop.eup %1817  ;;  %v616_v0 = vadd.f32 1.0, %v1816_v61  ;;  %1738 = vmatprep.mubr.msk.f32.mxu0 %vm678_vm1, %v2044_v54  ;;  %1759 = vmatprep.subr.msk.mxu1 %vm727_vm0, %v1957_v17  ;;  %v904_v55 = vpop.permute.xlu1 %903 }
 0x11e   : > { %v1820_v1 = vpop.eup %1819  ;;  %1837 = vrcp.f32 %v618_v62  ;;  %v619_v2 = vadd.f32 1.0, %v1818_v63  ;;  %v899_v57 = vpop.permute.xlu0 %898 }
 0x11f   : > { %v2081_v3 = vpop.eup %1821  ;;  %1839 = vrcp.f32 %v616_v0  ;;  %v617_v18 = vadd.f32 1.0, %v1820_v1  ;;  %1687 = vmatmul.mubr.msk.f32.gmra.mrb[2].mxu1 %vm678_vm1, %v2052_v58  ;;  %1739 = vmatmul.mubr.msk.f32.gmra.mrb[18].mxu0 %vm678_vm1, %v2052_v58 }
 0x120   : > { %v1824_v4 = vpop.eup %1823  ;;  %1841 = vrcp.f32 %v619_v2  ;;  %1320 = vst.msk [vmem:[%s2041_s19 + $0x30] sm:$0xff] %vm678_vm1, %v2081_v3 }
 0x121   : > { %v1826_v5 = vpop.eup %1825  ;;  %1843 = vrcp.f32 %v617_v18  ;;  %1689 = vmatprep.mubr.msk.f32.mxu1 %vm678_vm1, %v1824_v4  ;;  %1741 = vmatprep.mubr.msk.f32.mxu0 %vm678_vm1, %v1824_v4  ;;  %1318 = vst.msk [vmem:[%s2041_s19 + $0x20] sm:$0xff] %vm678_vm1, %v1824_v4  ;;  %v914_v18 = vpop.permute.xlu1 %913 }
 0x122   : > { %v1828_v6 = vpop.eup %1827  ;;  %1321 = vst.msk [vmem:[%s2041_s19 + $0x38] sm:$0xff] %vm678_vm1, %v1826_v5 }
 0x123   : > { %v1830_v7 = vpop.eup %1829  ;;  %1690 = vmatmul.mubr.msk.f32.gmra.mrb[4].mxu1 %vm678_vm1, %v1828_v6  ;;  %1742 = vmatmul.mubr.msk.f32.gmra.mrb[20].mxu0 %vm678_vm1, %v1828_v6  ;;  %1319 = vst.msk [vmem:[%s2041_s19 + $0x28] sm:$0xff] %vm678_vm1, %v1828_v6 }
 0x124   : > { %v1832_v8 = vpop.eup %1831  ;;  %v622_v9 = vadd.f32 1.0, %v1830_v7  ;;  %1692 = vmatprep.mubr.msk.f32.mxu1 %vm678_vm1, %v2081_v3  ;;  %1744 = vmatprep.mubr.msk.f32.mxu0 %vm678_vm1, %v2081_v3 }
 0x125   : > { %v1834_v10 = vpop.eup %1833  ;;  %v620_v11 = vadd.f32 1.0, %v1832_v8 }
 0x126   : > { %v1836_v12 = vpop.eup %1835  ;;  %1845 = vrcp.f32 %v622_v9  ;;  %v623_v13 = vadd.f32 1.0, %v1834_v10 }
 0x127   : > { %1847 = vrcp.f32 %v620_v11  ;;  %v621_v14 = vadd.f32 1.0, %v1836_v12  ;;  %1693 = vmatmul.mubr.msk.f32.gmra.mrb[6].mxu1 %vm678_vm1, %v1826_v5  ;;  %1745 = vmatmul.mubr.msk.f32.gmra.mrb[22].mxu0 %vm678_vm1, %v1826_v5 }
 0x128   : > { %v1838_v15 = vpop.eup %1837  ;;  %1849 = vrcp.f32 %v623_v13 }
 0x129   : > { %v1840_v16 = vpop.eup %1839  ;;  %1851 = vrcp.f32 %v621_v14  ;;  %1324 = vst.msk [vmem:[%s2041_s19 + $0x50] sm:$0xff] %vm678_vm1, %v1838_v15 }
 0x12a   : > { %v1842_v19 = vpop.eup %1841  ;;  %1695 = vmatprep.mubr.msk.f32.mxu1 %vm678_vm1, %v1840_v16  ;;  %1747 = vmatprep.mubr.msk.f32.mxu0 %vm678_vm1, %v1840_v16  ;;  %1322 = vst.msk [vmem:[%s2041_s19 + $0x40] sm:$0xff] %vm678_vm1, %v1840_v16 }
 0x12b   : > { %v1844_v20 = vpop.eup %1843  ;;  %1325 = vst.msk [vmem:[%s2041_s19 + $0x58] sm:$0xff] %vm678_vm1, %v1842_v19 }
 0x12c   : > { %1696 = vmatmul.mubr.msk.f32.gmra.mrb[8].mxu1 %vm678_vm1, %v1844_v20  ;;  %1748 = vmatmul.mubr.msk.f32.gmra.mrb[24].mxu0 %vm678_vm1, %v1844_v20  ;;  %1323 = vst.msk [vmem:[%s2041_s19 + $0x48] sm:$0xff] %vm678_vm1, %v1844_v20 }
 0x12d   : > { %1698 = vmatprep.mubr.msk.f32.mxu1 %vm678_vm1, %v1838_v15 }
 0x130   : > { %v1846_v21 = vpop.eup %1845  ;;  %1699 = vmatmul.mubr.msk.f32.gmra.mrb[10].mxu1 %vm678_vm1, %v1842_v19 }
 0x131   : > { %v1848_v22 = vpop.eup %1847  ;;  %1328 = vst.msk [vmem:[%s2041_s19 + $0x70] sm:$0xff] %vm678_vm1, %v1846_v21 }
 0x132   : > { %v1850_v23 = vpop.eup %1849  ;;  %1701 = vmatprep.mubr.msk.f32.mxu1 %vm678_vm1, %v1848_v22  ;;  %1326 = vst.msk [vmem:[%s2041_s19 + $0x60] sm:$0xff] %vm678_vm1, %v1848_v22 }
 0x133   : > { %v1852_v24 = vpop.eup %1851  ;;  %1329 = vst.msk [vmem:[%s2041_s19 + $0x78] sm:$0xff] %vm678_vm1, %v1850_v23 }
 0x134   : > { %1702 = vmatmul.mubr.msk.f32.gmra.mrb[12].mxu1 %vm678_vm1, %v1852_v24  ;;  %1327 = vst.msk [vmem:[%s2041_s19 + $0x68] sm:$0xff] %vm678_vm1, %v1852_v24 }
 0x135   : > { %1704 = vmatprep.mubr.msk.f32.mxu1 %vm678_vm1, %v1846_v21 }
 0x138   : > { %1705 = vmatmul.mubr.msk.f32.gmra.mrb[14].mxu1 %vm678_vm1, %v1850_v23 }
 0x139   : > { %1709 = vmatprep.mubr.msk.f32.mxu1 %vm678_vm1, %v2047_v56 }
 0x13c   : > { %1710 = vmatmul.mubr.msk.f32.vlgmr.msra.gmra.mrb[16].mxu1 %vm678_vm1, %v2061_v34  ;;  %v2201_v34 = vld [vmem:[%s2326_s6 + $0x1] ss:$0 sm:$0xff] }
 0x13d   : > { %1760 = vmatpush3.msk.msra.mxu1 %vm727_vm0, %v1957_v17  ;;  %1712 = vmatprep.mubr.msk.f32.mxu1 %vm678_vm1, %v2044_v54  ;;  %v2190_v54 = vld [vmem:[%s2326_s6] ss:$0 sm:$0xff] }
 0x140   : > { %1713 = vmatmul.mubr.msk.f32.gmra.mrb[18].mxu1 %vm678_vm1, %v2052_v58 }
 0x141   : > { %1715 = vmatprep.mubr.msk.f32.mxu1 %vm678_vm1, %v1824_v4 }
 0x144   : > { %1716 = vmatmul.mubr.msk.f32.gmra.mrb[20].mxu1 %vm678_vm1, %v1828_v6  ;;  %v909_v6 = vpop.permute.xlu0 %908 }
 0x145   : > { %1718 = vmatprep.mubr.msk.f32.mxu1 %vm678_vm1, %v2081_v3 }
 0x148   : > { %1719 = vmatmul.mubr.msk.f32.gmra.mrb[22].mxu1 %vm678_vm1, %v1826_v5 }
 0x149   : > { %1721 = vmatprep.mubr.msk.f32.mxu1 %vm678_vm1, %v1840_v16 }
 0x14c   : > { %1722 = vmatmul.mubr.msk.f32.gmra.mrb[24].mxu1 %vm678_vm1, %v1844_v20 }
 0x14d   : > { %1724 = vmatprep.mubr.msk.f32.mxu1 %vm678_vm1, %v1838_v15 }
 0x150   : > { %1725 = vmatmul.mubr.msk.f32.gmra.mrb[26].mxu1 %vm678_vm1, %v1842_v19 }
 0x151   : > { %1727 = vmatprep.mubr.msk.f32.mxu1 %vm678_vm1, %v1848_v22 }
 0x154   : > { %1728 = vmatmul.mubr.msk.f32.gmra.mrb[28].mxu1 %vm678_vm1, %v1852_v24 }
 0x155   : > { %1730 = vmatprep.mubr.msk.f32.mxu1 %vm678_vm1, %v1846_v21 }
 0x158   : > { %1731 = vmatmul.mubr.msk.f32.gmra.mrb[30].mxu1 %vm678_vm1, %v1850_v23 }
 0x159   : > { %1750 = vmatprep.mubr.msk.f32.mxu1 %vm678_vm1, %v1838_v15 }
 0x15c   : > { %1751 = vmatmul.mubr.msk.f32.vlgmr.msra.gmra.mrb[32].mxu1 %vm678_vm1, %v1842_v19 }
 0x15d   : > { %1753 = vmatprep.mubr.msk.f32.mxu1 %vm678_vm1, %v1848_v22 }
 0x160   : > { %1754 = vmatmul.mubr.msk.f32.gmra.mrb[34].mxu1 %vm678_vm1, %v1852_v24 }
 0x161   : > { %1756 = vmatprep.mubr.msk.f32.mxu1 %vm678_vm1, %v1846_v21 }
 0x164   : > { %1757 = vmatmul.mubr.msk.f32.gmra.mrb[36].mxu1 %vm678_vm1, %v1850_v23 }
 0x1ee   : > { %v1685_v17 = vpop.f32.mrb[0].mxu1  ;;  %v1737_v25 = vpop.f32.mrb[16].mxu0 }
 0x1ef   : > { %v797_v26 = vpop.f32.mrb[1].mxu1  ;;  %v1219_v27 = vpop.f32.mrb[17].mxu0  ;;  %v803_v56 = vadd.f32 %v1685_v17, %v2190_v54  ;;  %v1225_v5 = vadd.f32 %v1737_v25, %v2206_v60 }
 0x1f0   : > { %v798_v59 = vadd.f32 %v2190_v54, %v797_v26  ;;  %v1220_v8 = vadd.f32 %v2206_v60, %v1219_v27  ;;  %v924_v17 = vpop.permute.xlu1 %923 }
 0x1f1   : > { %v957_v62 = vmul.f32 %v884_v52, %v803_v56 }
 0x1f2   : > { %v1688_v28 = vpop.f32.mrb[2].mxu1  ;;  %v1740_v29 = vpop.f32.mrb[18].mxu0  ;;  %v956_v2 = vmul.f32 %v879_v47, %v798_v59 }
 0x1f3   : > { %v807_v31 = vpop.f32.mrb[3].mxu1  ;;  %v1229_v32 = vpop.f32.mrb[19].mxu0  ;;  %v813_v63 = vadd.f32 %v1688_v28, %v2190_v54  ;;  %v1235_v22 = vadd.f32 %v1740_v29, %v2206_v60 }
 0x1f4   : > { %v808_v3 = vadd.f32 %v2190_v54, %v807_v31  ;;  %v1230_v24 = vadd.f32 %v2206_v60, %v1229_v32  ;;  %v919_v31 = vpop.permute.xlu0 %918 }
 0x1f5   : > { %v959_v11 = vmul.f32 %v894_v50, %v813_v63 }
 0x1f6   : > { %v1691_v33 = vpop.f32.mrb[4].mxu1  ;;  %v2161_v35 = vpop.f32.mrb[20].mxu0  ;;  %v958_v16 = vmul.f32 %v889_v42, %v808_v3 }
 0x1f7   : > { %v817_v36 = vpop.f32.mrb[5].mxu1  ;;  %v2163_v37 = vpop.f32.mrb[21].mxu0  ;;  %v823_v12 = vadd.f32 %v1691_v33, %v2190_v54  ;;  %v1245_v52 = vadd.f32 %v2161_v35, %v2206_v60 }
 0x1f8   : > { %v818_v19 = vadd.f32 %v2190_v54, %v817_v36 }
 0x1f9   : > { %v961_v27 = vmul.f32 %v904_v55, %v823_v12 }
 0x1fa   : > { %v1694_v38 = vpop.f32.mrb[6].mxu1  ;;  %v2165_v39 = vpop.f32.mrb[22].mxu0  ;;  %v960_v29 = vmul.f32 %v899_v57, %v818_v19 }
 0x1fb   : > { %v2167_v40 = vpop.f32.mrb[7].mxu1  ;;  %v2169_v41 = vpop.f32.mrb[23].mxu0  ;;  %v833_v28 = vadd.f32 %v1694_v38, %v2190_v54  ;;  %v1240_v38 = vadd.f32 %v2206_v60, %v2163_v37  ;;  %v1255_v3 = vadd.f32 %v2165_v39, %v2206_v60 }
 0x1fc   : > { %v828_v47 = vadd.f32 %v2190_v54, %v2167_v40 }
 0x1fd   : > { %v963_v57 = vmul.f32 %v914_v18, %v833_v28 }
 0x1ff   : > { %v2171_v43 = vpop.f32.mrb[8].mxu1  ;;  %v2173_v44 = vpop.f32.mrb[24].mxu0 }
 0x200   : > { %v2175_v45 = vpop.f32.mrb[9].mxu1  ;;  %v2177_v46 = vpop.f32.mrb[25].mxu0  ;;  %v843_v40 = vadd.f32 %v2171_v43, %v2190_v54  ;;  %v1250_v43 = vadd.f32 %v2206_v60, %v2169_v41  ;;  %v1265_v41 = vadd.f32 %v2173_v44, %v2206_v60 }
 0x201   : > { %v838_v35 = vadd.f32 %v2190_v54, %v2175_v45 }
 0x203   : > { %v2179_v48 = vpop.f32.mrb[10].mxu1  ;;  %v964_v39 = vmul.f32 %v919_v31, %v838_v35 }
 0x204   : > { %v2181_v49 = vpop.f32.mrb[11].mxu1  ;;  %v853_v45 = vadd.f32 %v2179_v48, %v2190_v54  ;;  %v1260_v48 = vadd.f32 %v2206_v60, %v2177_v46 }
 0x207   : > { %v2183_v51 = vpop.f32.mrb[12].mxu1 }
 0x208   : > { %v2185_v53 = vpop.f32.mrb[13].mxu1 }
 0x20b   : > { %v2192_v30 = vpop.f32.mrb[14].mxu1 }
 0x20c   : > { %v2195_v58 = vpop.f32.mrb[15].mxu1  ;;  %v873_v31 = vadd.f32 %v2192_v30, %v2190_v54 }
 0x20f   : > { %v1711_v61 = vpop.f32.mrb[16].mxu1 }
 0x210   : > { %v1054_v0 = vadd.f32 %v1711_v61, %v2201_v34  ;;  %v1048_v1 = vpop.f32.mrb[17].mxu1 }
 0x211   : > { %v1049_v4 = vadd.f32 %v2201_v34, %v1048_v1  ;;  %v934_v1 = vpop.permute.xlu1 %933 }
 0x212   : > { %v1128_v7 = vmul.f32 %v1054_v0, %v957_v62  ;;  %v962_v0 = vmul.f32 %v909_v6, %v828_v47  ;;  %v965_v6 = vmul.f32 %v924_v17, %v843_v40  ;;  %v858_v17 = vadd.f32 %v2190_v54, %v2185_v53 }
 0x213   : > { %v1127_v9 = vmul.f32 %v1049_v4, %v956_v2  ;;  %v1714_v10 = vpop.f32.mrb[18].mxu1  ;;  %v929_v4 = vpop.permute.xlu0 %928  ;;  %v868_v53 = vadd.f32 %v2190_v54, %v2195_v58 }
 0x214   : > { %v1064_v13 = vadd.f32 %v1714_v10, %v2201_v34  ;;  %v1058_v14 = vpop.f32.mrb[19].mxu1  ;;  %v1299_v15 = vmul.f32 %v1225_v5, %v1128_v7 }
 0x215   : > { %v1059_v20 = vadd.f32 %v2201_v34, %v1058_v14  ;;  %v1298_v21 = vmul.f32 %v1220_v8, %v1127_v9 }
 0x216   : > { %v1130_v23 = vmul.f32 %v1064_v13, %v959_v11  ;;  %1348 = vrot.lane.b32.xlu1 %v1299_v15, %s1862_s26  ;;  %v848_v11 = vadd.f32 %v2190_v54, %v2181_v49  ;;  %v944_v15 = vpop.permute.xlu1 %943  ;;  %v863_v49 = vadd.f32 %v2183_v51, %v2190_v54 }
 0x217   : > { %v1129_v25 = vmul.f32 %v1059_v20, %v958_v16  ;;  %v1717_v26 = vpop.f32.mrb[20].mxu1  ;;  %1346 = vrot.lane.b32.xlu0 %v1298_v21, %s1862_s26  ;;  %v967_v20 = vmul.f32 %v934_v1, %v853_v45  ;;  %v939_v21 = vpop.permute.xlu0 %938 }
 0x218   : > { %v1074_v33 = vadd.f32 %v1717_v26, %v2201_v34  ;;  %v1068_v36 = vpop.f32.mrb[21].mxu1  ;;  %v1301_v42 = vmul.f32 %v1235_v22, %v1130_v23  ;;  %v969_v51 = vmul.f32 %v944_v15, %v863_v49 }
 0x219   : > { %v1069_v50 = vadd.f32 %v2201_v34, %v1068_v36  ;;  %v1300_v32 = vmul.f32 %v1230_v24, %v1129_v25  ;;  %v966_v24 = vmul.f32 %v929_v4, %v848_v11 }
 0x21a   : > { %v1132_v56 = vmul.f32 %v1074_v33, %v961_v27  ;;  %1352 = vrot.lane.b32.xlu1 %v1301_v42, %s1862_s26  ;;  %v968_v42 = vmul.f32 %v939_v21, %v858_v17 }
 0x21b   : > { %v1131_v55 = vmul.f32 %v1069_v50, %v960_v29  ;;  %v1720_v59 = vpop.f32.mrb[22].mxu1  ;;  %1350 = vrot.lane.b32.xlu0 %v1300_v32, %s1862_s26  ;;  %v954_v29 = vpop.permute.xlu1 %953 }
 0x21c   : > { %v1084_v61 = vadd.f32 %v1720_v59, %v2201_v34  ;;  %v1078_v62 = vpop.f32.mrb[23].mxu1  ;;  %v1303_v63 = vmul.f32 %v1245_v52, %v1132_v56  ;;  %v949_v50 = vpop.permute.xlu0 %948 }
 0x21d   : > { %v1079_v2 = vadd.f32 %v2201_v34, %v1078_v62  ;;  %v1302_v37 = vmul.f32 %v1240_v38, %v1131_v55  ;;  %v971_v38 = vmul.f32 %v954_v29, %v873_v31 }
 0x21e   : > { %v1134_v18 = vmul.f32 %v1084_v61, %v963_v57  ;;  %1356 = vrot.lane.b32.xlu1 %v1303_v63, %s1862_s26  ;;  %v970_v57 = vmul.f32 %v949_v50, %v868_v53 }
 0x21f   : > { %v1133_v5 = vmul.f32 %v1079_v2, %v962_v0  ;;  %v1723_v7 = vpop.f32.mrb[24].mxu1  ;;  %1354 = vrot.lane.b32.xlu0 %v1302_v37, %s1862_s26 }
 0x220   : > { %v1094_v8 = vadd.f32 %v1723_v7, %v2201_v34  ;;  %v1088_v9 = vpop.f32.mrb[25].mxu1  ;;  %v1305_v10 = vmul.f32 %v1255_v3, %v1134_v18 }
 0x221   : > { %v1089_v12 = vadd.f32 %v2201_v34, %v1088_v9  ;;  %v1304_v13 = vmul.f32 %v1250_v43, %v1133_v5 }
 0x222   : > { %v1136_v14 = vmul.f32 %v1094_v8, %v965_v6  ;;  %1360 = vrot.lane.b32.xlu1 %v1305_v10, %s1862_s26 }
 0x223   : > { %v1135_v16 = vmul.f32 %v1089_v12, %v964_v39  ;;  %v1726_v19 = vpop.f32.mrb[26].mxu1  ;;  %1358 = vrot.lane.b32.xlu0 %v1304_v13, %s1862_s26 }
 0x224   : > { %v1104_v22 = vadd.f32 %v1726_v19, %v2201_v34  ;;  %v1098_v23 = vpop.f32.mrb[27].mxu1  ;;  %v1307_v44 = vmul.f32 %v1265_v41, %v1136_v14 }
 0x225   : > { %v1099_v46 = vadd.f32 %v2201_v34, %v1098_v23  ;;  %v1306_v25 = vmul.f32 %v1260_v48, %v1135_v16 }
 0x226   : > { %v1138_v26 = vmul.f32 %v1104_v22, %v967_v20  ;;  %1364 = vrot.lane.b32.xlu1 %v1307_v44, %s1862_s26 }
 0x227   : > { %v1137_v27 = vmul.f32 %v1099_v46, %v966_v24  ;;  %v1729_v28 = vpop.f32.mrb[28].mxu1  ;;  %1362 = vrot.lane.b32.xlu0 %v1306_v25, %s1862_s26 }
 0x228   : > { %v1114_v33 = vadd.f32 %v1729_v28, %v2201_v34  ;;  %v1108_v36 = vpop.f32.mrb[29].mxu1 }
 0x229   : > { %v1109_v47 = vadd.f32 %v2201_v34, %v1108_v36 }
 0x22a   : > { %v1140_v32 = vmul.f32 %v1114_v33, %v969_v51 }
 0x22b   : > { %v1139_v52 = vmul.f32 %v1109_v47, %v968_v42  ;;  %v1732_v56 = vpop.f32.mrb[30].mxu1 }
 0x22c   : > { %v1124_v55 = vadd.f32 %v1732_v56, %v2201_v34  ;;  %v1118_v59 = vpop.f32.mrb[31].mxu1 }
 0x22d   : > { %v1119_v30 = vadd.f32 %v2201_v34, %v1118_v59 }
 0x22e   : > { %v1142_v40 = vmul.f32 %v1124_v55, %v971_v38 }
 0x22f   : > { %v1141_v61 = vmul.f32 %v1119_v30, %v970_v57  ;;  %v1752_v62 = vpop.f32.mrb[32].mxu1 }
 0x230   : > { %v1275_v63 = vadd.f32 %v1752_v62, %v2206_v60  ;;  %v1269_v54 = vpop.f32.mrb[33].mxu1 }
 0x231   : > { %v1270_v58 = vadd.f32 %v2206_v60, %v1269_v54 }
 0x232   : > { %v1309_v0 = vmul.f32 %v1275_v63, %v1138_v26 }
 0x233   : > { %v1308_v35 = vmul.f32 %v1270_v58, %v1137_v27  ;;  %v1755_v1 = vpop.f32.mrb[34].mxu1 }
 0x234   : > { %v1285_v2 = vadd.f32 %v1755_v1, %v2206_v60  ;;  %1368 = vrot.lane.b32.xlu1 %v1309_v0, %s1862_s26  ;;  %v1279_v37 = vpop.f32.mrb[35].mxu1 }
 0x235   : > { %v1280_v3 = vadd.f32 %v2206_v60, %v1279_v37  ;;  %1366 = vrot.lane.b32.xlu0 %v1308_v35, %s1862_s26 }
 0x236   : > { %v1311_v34 = vmul.f32 %v1285_v2, %v1140_v32 }
 0x237   : > { %v1310_v4 = vmul.f32 %v1280_v3, %v1139_v52  ;;  %v1758_v18 = vpop.f32.mrb[36].mxu1 }
 0x238   : > { %v1295_v43 = vadd.f32 %v1758_v18, %v2206_v60  ;;  %1372 = vrot.lane.b32.xlu1 %v1311_v34, %s1862_s26  ;;  %v1289_v5 = vpop.f32.mrb[37].mxu1 }
 0x239   : > { %v1290_v7 = vadd.f32 %v2206_v60, %v1289_v5  ;;  %1370 = vrot.lane.b32.xlu0 %v1310_v4, %s1862_s26 }
 0x23a   : > { %v1313_v6 = vmul.f32 %v1295_v43, %v1142_v40 }
 0x23b   : > { %v1312_v45 = vmul.f32 %v1290_v7, %v1141_v61 }
 0x23c   : > { %1376 = vrot.lane.b32.xlu1 %v1313_v6, %s1862_s26 }
 0x23d   : > { %1374 = vrot.lane.b32.xlu0 %v1312_v45, %s1862_s26 }
 0x288   : > { %v1349_v8 = vpop.permute.xlu1 %1348 }
 0x289   : > { %1396 = vst.msk [vmem:[%s2041_s19 + $0x8] sm:$0xff] %vm1394_vm2, %v1349_v8  ;;  %v1347_v9 = vpop.permute.xlu0 %1346 }
 0x28a   : > { %1395 = vst.msk [vmem:[%s2041_s19] sm:$0xff] %vm1394_vm2, %v1347_v9 }
 0x28c   : > { %v1353_v60 = vpop.permute.xlu1 %1352 }
 0x28d   : > { %1398 = vst.msk [vmem:[%s2041_s19 + $0x18] sm:$0xff] %vm1394_vm2, %v1353_v60  ;;  %v1351_v10 = vpop.permute.xlu0 %1350 }
 0x28e   : > { %1397 = vst.msk [vmem:[%s2041_s19 + $0x10] sm:$0xff] %vm1394_vm2, %v1351_v10 }
 0x290   : > { %v1357_v39 = vpop.permute.xlu1 %1356 }
 0x291   : > { %1400 = vst.msk [vmem:[%s2041_s19 + $0x28] sm:$0xff] %vm1394_vm2, %v1357_v39  ;;  %v1355_v11 = vpop.permute.xlu0 %1354 }
 0x292   : > { %1399 = vst.msk [vmem:[%s2041_s19 + $0x20] sm:$0xff] %vm1394_vm2, %v1355_v11 }
 0x294   : > { %v1361_v12 = vpop.permute.xlu1 %1360 }
 0x295   : > { %1402 = vst.msk [vmem:[%s2041_s19 + $0x38] sm:$0xff] %vm1394_vm2, %v1361_v12  ;;  %v1359_v13 = vpop.permute.xlu0 %1358 }
 0x296   : > { %1401 = vst.msk [vmem:[%s2041_s19 + $0x30] sm:$0xff] %vm1394_vm2, %v1359_v13 }
 0x298   : > { %v1365_v41 = vpop.permute.xlu1 %1364 }
 0x299   : > { %1404 = vst.msk [vmem:[%s2041_s19 + $0x48] sm:$0xff] %vm1394_vm2, %v1365_v41  ;;  %v1363_v14 = vpop.permute.xlu0 %1362 }
 0x29a   : > { %1403 = vst.msk [vmem:[%s2041_s19 + $0x40] sm:$0xff] %vm1394_vm2, %v1363_v14 }
 0x2a6   : > { %v1369_v48 = vpop.permute.xlu1 %1368 }
 0x2a7   : > { %1406 = vst.msk [vmem:[%s2041_s19 + $0x58] sm:$0xff] %vm1394_vm2, %v1369_v48  ;;  %v1367_v15 = vpop.permute.xlu0 %1366 }
 0x2a8   : > { %1405 = vst.msk [vmem:[%s2041_s19 + $0x50] sm:$0xff] %vm1394_vm2, %v1367_v15 }
 0x2aa   : > { %v1373_v16 = vpop.permute.xlu1 %1372 }
 0x2ab   : > { %1408 = vst.msk [vmem:[%s2041_s19 + $0x68] sm:$0xff] %vm1394_vm2, %v1373_v16  ;;  %v1371_v19 = vpop.permute.xlu0 %1370 }
 0x2ac   : > { %1407 = vst.msk [vmem:[%s2041_s19 + $0x60] sm:$0xff] %vm1394_vm2, %v1371_v19 }
 0x2ae   : > { %v1377_v20 = vpop.permute.xlu1 %1376 }
 0x2af   : > { %1410 = vst.msk [vmem:[%s2041_s19 + $0x78] sm:$0xff] %vm1394_vm2, %v1377_v20  ;;  %v1375_v49 = vpop.permute.xlu0 %1374 }
 0x2b0   : > { %1409 = vst.msk [vmem:[%s2041_s19 + $0x70] sm:$0xff] %vm1394_vm2, %v1375_v49 }
 0x2b1 PF: > { %s17_s24 = sadd.s32 1, %s1859_s24  }
 0x2b2   : > { %p14_p4 = scmp.ge.s32.totalorder %s17_s24, 4  }
 0x2b4   :  { %16 = sbr.rel (!%p14_p4) target bundleno = 1 (0x1), region = 83 }

</bundles_post_ra>
